<compile_context>
chip_gen: v7x
topology: tpu7x:2x2x1
jax: 0.10.0
libtpu: 0.0.40
codegen_flags: <defaults>
</compile_context>

<pallas_src>
import jax
import jax.numpy as jnp
from jax import lax
from jax.experimental import pallas as pl
from jax.experimental.pallas import tpu as pltpu


_SMOOTH = 1.0
_VMEM_MARGIN = 6 * 1024 * 1024   # headroom for accumulators / internal scratch
_TEMP_F32_TILES = 5              # conservative count of tile-sized f32 temporaries

_ARBITRARY = getattr(pltpu, "ARBITRARY", "arbitrary")
_CORE_PARALLEL = getattr(pltpu, "CORE_PARALLEL", getattr(pltpu, "PARALLEL", "parallel"))


def _round_up(x, m):
    return ((x + m - 1) // m) * m


def _cdiv(a, b):
    return -(-a // b)


def _device_params():
    """(num_tensorcores_per_chip, vmem_limit_bytes) chosen at trace time."""
    kind = ""
    try:
        kind = jax.devices()[0].device_kind.lower()
    except Exception:
        pass
    if "v7" in kind or "tpu7" in kind:
        # v7x: 2 TensorCores per chip, 64 MiB VMEM per core.
        return 2, 56 * 1024 * 1024
    # v5e / v6e (and unknown): single TensorCore, 128 MiB VMEM.
    return 1, 64 * 1024 * 1024


def _make_dice_kernel(dfold, tile_d, tiles_per_split, needs_mask):
    """Kernel over grid (num_splits, n_row_blocks, tiles_per_split).

    x_ref, t_ref         : (tile_nf, tile_d) VMEM tiles in their native dtype.
    inter_ref, sum_ref   : (1, tile_nf, 1) f32 accumulator blocks, resident
                           across the reduction axis (k).
    """

    def kernel(x_ref, t_ref, inter_ref, sum_ref):
        s = pl.program_id(0)   # split (TensorCore shard on v7x)
        k = pl.program_id(2)   # sequential reduction over column tiles

        @pl.when(k == 0)
        def _init():
            inter_ref[...] = jnp.zeros_like(inter_ref)
            sum_ref[...] = jnp.zeros_like(sum_ref)

        def accumulate(x, t):
            # Native-dtype VPU math; cast only the results to f32.
            prod = (x * t).astype(jnp.float32)
            tot = (x + t).astype(jnp.float32)      # sum(x)+sum(t) == sum(x+t)
            inter_ref[...] += jnp.sum(prod, axis=1, keepdims=True)[None]
            sum_ref[...] += jnp.sum(tot, axis=1, keepdims=True)[None]

        if not needs_mask:
            accumulate(x_ref[...], t_ref[...])
        else:
            g = s * tiles_per_split + k            # unclamped global column tile
            tile_start = g * tile_d

            @pl.when(tile_start + tile_d <= dfold)  # interior tile: no mask work
            def _fast():
                accumulate(x_ref[...], t_ref[...])

            @pl.when(tile_start + tile_d > dfold)   # boundary / ghost tile only
            def _masked():
                x = x_ref[...]
                t = t_ref[...]
                col = tile_start + lax.broadcasted_iota(jnp.int32, x.shape, 1)
                valid = col < dfold
                accumulate(jnp.where(valid, x, jnp.zeros_like(x)),
                           jnp.where(valid, t, jnp.zeros_like(t)))

    return kernel


@jax.jit
def binary_dice_loss(inputs, targets):
    """Equivalent of BinaryDiceLoss.forward(input, targets) -> scalar loss."""
    n = targets.shape[0]
    d = inputs.size // n

    # --- Fold the reduction dim into sublanes for tiny batches ---------------
    fold = 1
    if n < 8:
        for f in (8, 4, 2):
            if d % f == 0:
                fold = f
                break
    nf = n * fold
    dfold = d // fold
    x2 = inputs.reshape(nf, dfold)   # free: contiguous row-major split
    t2 = targets.reshape(nf, dfold)

    # --- Generation-aware VMEM-budgeted tiling --------------------------------
    num_cores, vmem_cap = _device_params()
    usable = vmem_cap - _VMEM_MARGIN

    def cost_per_col(rows):
        """VMEM bytes per lane-column: double-buffered inputs + f32 temporaries."""
        c = 0
        for arr in (x2, t2):
            its = jnp.dtype(arr.dtype).itemsize
            pack = max(1, 4 // its)                       # sublane packing of narrow dtypes
            c += 2 * _round_up(rows, 8 * pack) * its      # 2 pipeline buffers per input
        c += _TEMP_F32_TILES * _round_up(rows, 8) * 4     # f32 compute temporaries
        return c

    # Row blocking guard: for huge nf, tile the row dim so (rows, 128) tiles fit.
    tile_nf = nf
    if usable // cost_per_col(nf) < 128:
        per_elem = 2 * sum(jnp.dtype(a.dtype).itemsize for a in (x2, t2)) \
            + 4 * _TEMP_F32_TILES
        tile_nf = max(8, (usable // (128 * per_elem)) // 8 * 8)

    tile_d = (usable // cost_per_col(tile_nf)) // 128 * 128
    tile_d = max(tile_d, 128)
    tile_d = min(tile_d, _round_up(dfold, 128))
    n_row_blocks = _cdiv(nf, tile_nf)

    total_tiles = _cdiv(dfold, tile_d)
    num_splits = num_cores if (num_cores > 1 and total_tiles >= num_cores) else 1
    tiles_per_split = _cdiv(total_tiles, num_splits)
    needs_mask = (num_splits * tiles_per_split * tile_d) != dfold
    last_tile = total_tiles - 1

    def in_map(s, r, k):
        g = s * tiles_per_split + k
        return (r, jnp.minimum(g, last_tile))   # clamp; ghost tiles masked in kernel

    def out_map(s, r, k):
        return (s, r, 0)

    split_sem = _CORE_PARALLEL if num_splits > 1 else _ARBITRARY

    inter_p, sum_p = pl.pallas_call(
        _make_dice_kernel(dfold, tile_d, tiles_per_split, needs_mask),
        out_shape=(
            jax.ShapeDtypeStruct((num_splits, nf, 1), jnp.float32),
            jax.ShapeDtypeStruct((num_splits, nf, 1), jnp.float32),
        ),
        grid_spec=pltpu.PrefetchScalarGridSpec(
            num_scalar_prefetch=0,
            grid=(num_splits, n_row_blocks, tiles_per_split),
            in_specs=[
                pl.BlockSpec((tile_nf, tile_d), in_map),
                pl.BlockSpec((tile_nf, tile_d), in_map),
            ],
            out_specs=[
                pl.BlockSpec((1, tile_nf, 1), out_map),
                pl.BlockSpec((1, tile_nf, 1), out_map),
            ],
        ),
        compiler_params=pltpu.CompilerParams(
            dimension_semantics=(split_sem, _ARBITRARY, _ARBITRARY),
            vmem_limit_bytes=int(vmem_cap),
        ),
    )(x2, t2)

    # Tiny O(N) epilogue in plain JAX: combine per-split / per-folded-row
    # partial sums into per-sample dice and the final mean loss.
    inter_rows = inter_p.sum(axis=0)[:, 0].reshape(n, fold).sum(axis=1)
    tot_rows = sum_p.sum(axis=0)[:, 0].reshape(n, fold).sum(axis=1)
    dice = (2.0 * inter_rows + _SMOOTH) / (tot_rows + _SMOOTH)
    return 1.0 - jnp.sum(dice) / n


def _reference_dice_loss(inputs, targets):
    """Pure-JAX mirror of the PyTorch forward, for verification."""
    n = targets.shape[0]
    x = inputs.reshape(n, -1)
    t = targets.reshape(n, -1)
    inter = (x * t).sum(axis=1)
    dice = (2.0 * inter + _SMOOTH) / (x.sum(axis=1) + t.sum(axis=1) + _SMOOTH)
    return 1.0 - dice.sum() / n


if __name__ == "__main__":
    key = jax.random.PRNGKey(0)
    k1, k2, k3, k4 = jax.random.split(key, 4)

    # Case 1: NCHW batch=2, channels=4, spatial 16x16 (D=1024, sublane-fold path,
    # fully-aligned fast path — no masking emitted).
    x1 = jax.nn.sigmoid(jax.random.normal(k1, (2, 4, 16, 16), dtype=jnp.float32))
    t1 = (jax.random.uniform(k2, (2, 4, 16, 16)) > 0.5).astype(jnp.float32)
    loss1 = jax.block_until_ready(binary_dice_loss(x1, t1))
    ref1 = _reference_dice_loss(x1, t1)
    assert jnp.allclose(loss1, ref1, atol=1e-5, rtol=1e-5), (loss1, ref1)

    # Case 2: odd flattened dim (D=3*5*7=105) -> exercises the gated in-kernel
    # masked boundary-tile path (no zero-padding in the wrapper).
    x2 = jax.nn.sigmoid(jax.random.normal(k3, (2, 3, 5, 7), dtype=jnp.float32))
    t2 = (jax.random.uniform(k4, (2, 3, 5, 7)) > 0.5).astype(jnp.float32)
    loss2 = jax.block_until_ready(binary_dice_loss(x2, t2))
    ref2 = _reference_dice_loss(x2, t2)
    assert jnp.allclose(loss2, ref2, atol=1e-5, rtol=1e-5), (loss2, ref2)

    print("KERNEL_OK")
</pallas_src>

<mosaic_0001>
module attributes {stable_mosaic.version = 11 : i64} {
  func.func @kernel(%arg0: i32, %arg1: i32, %arg2: i32, %arg3: memref<16x128xf32, #tpu.memory_space<vmem>>, %arg4: memref<16x128xf32, #tpu.memory_space<vmem>>, %arg5: memref<1x16x1xf32, #tpu.memory_space<vmem>>, %arg6: memref<1x16x1xf32, #tpu.memory_space<vmem>>) attributes {dimension_semantics = [#tpu.dimension_semantics<arbitrary>, #tpu.dimension_semantics<arbitrary>, #tpu.dimension_semantics<arbitrary>], iteration_bounds = array<i64: 1, 1, 1>, scalar_prefetch = 0 : i64, scratch_operands = 0 : i64, tpu.core_type = #tpu.core_type<tc>, window_params = [{transform_indices = @transform_0, window_bounds = array<i64: 16, 128>}, {transform_indices = @transform_1, window_bounds = array<i64: 16, 128>}, {transform_indices = @transform_2, window_bounds = array<i64: 1, 16, 1>}, {transform_indices = @transform_3, window_bounds = array<i64: 1, 16, 1>}]} {
    %c0_i32 = arith.constant 0 : i32
    %0 = arith.cmpi eq, %arg2, %c0_i32 : i32
    %1 = arith.extui %0 : i1 to i32
    %c0_i32_0 = arith.constant 0 : i32
    %2 = arith.cmpi ne, %1, %c0_i32_0 : i32
    scf.if %2 {
      %cst_17 = arith.constant 0.000000e+00 : f32
      %19 = vector.broadcast %cst_17 : f32 to vector<1x16x1xf32>
      %c0_18 = arith.constant 0 : index
      %c0_19 = arith.constant 0 : index
      %c0_20 = arith.constant 0 : index
      %20 = vector.load %arg5[%c0_18, %c0_19, %c0_20] : memref<1x16x1xf32, #tpu.memory_space<vmem>>, vector<1x16x1xf32>
      tpu.vector_store %arg5[%c0_18, %c0_19, %c0_20], %19 {strides = array<i32>} : memref<1x16x1xf32, #tpu.memory_space<vmem>>, vector<1x16x1xf32>,
      %cst_21 = arith.constant 0.000000e+00 : f32
      %21 = vector.broadcast %cst_21 : f32 to vector<1x16x1xf32>
      %c0_22 = arith.constant 0 : index
      %c0_23 = arith.constant 0 : index
      %c0_24 = arith.constant 0 : index
      %22 = vector.load %arg6[%c0_22, %c0_23, %c0_24] : memref<1x16x1xf32, #tpu.memory_space<vmem>>, vector<1x16x1xf32>
      tpu.vector_store %arg6[%c0_22, %c0_23, %c0_24], %21 {strides = array<i32>} : memref<1x16x1xf32, #tpu.memory_space<vmem>>, vector<1x16x1xf32>,
    } else {
    }
    %c0 = arith.constant 0 : index
    %c0_1 = arith.constant 0 : index
    %3 = vector.load %arg3[%c0, %c0_1] : memref<16x128xf32, #tpu.memory_space<vmem>>, vector<16x128xf32>
    %c0_2 = arith.constant 0 : index
    %c0_3 = arith.constant 0 : index
    %4 = vector.load %arg4[%c0_2, %c0_3] : memref<16x128xf32, #tpu.memory_space<vmem>>, vector<16x128xf32>
    %5 = arith.mulf %3, %4 : vector<16x128xf32>
    %6 = arith.addf %3, %4 : vector<16x128xf32>
    %c0_4 = arith.constant 0 : index
    %c0_5 = arith.constant 0 : index
    %c0_6 = arith.constant 0 : index
    %7 = vector.load %arg5[%c0_4, %c0_5, %c0_6] : memref<1x16x1xf32, #tpu.memory_space<vmem>>, vector<1x16x1xf32>
    %cst = arith.constant dense<0.000000e+00> : vector<16xf32>
    %8 = vector.multi_reduction <add>, %5, %cst [1] : vector<16x128xf32> to vector<16xf32>
    %9 = vector.shape_cast %8 : vector<16xf32> to vector<16x1xf32>
    %10 = vector.shape_cast %9 : vector<16x1xf32> to vector<1x16x1xf32>
    %11 = arith.addf %7, %10 : vector<1x16x1xf32>
    %c0_7 = arith.constant 0 : index
    %c0_8 = arith.constant 0 : index
    %c0_9 = arith.constant 0 : index
    %12 = vector.load %arg5[%c0_7, %c0_8, %c0_9] : memref<1x16x1xf32, #tpu.memory_space<vmem>>, vector<1x16x1xf32>
    tpu.vector_store %arg5[%c0_7, %c0_8, %c0_9], %11 {strides = array<i32>} : memref<1x16x1xf32, #tpu.memory_space<vmem>>, vector<1x16x1xf32>,
    %c0_10 = arith.constant 0 : index
    %c0_11 = arith.constant 0 : index
    %c0_12 = arith.constant 0 : index
    %13 = vector.load %arg6[%c0_10, %c0_11, %c0_12] : memref<1x16x1xf32, #tpu.memory_space<vmem>>, vector<1x16x1xf32>
    %cst_13 = arith.constant dense<0.000000e+00> : vector<16xf32>
    %14 = vector.multi_reduction <add>, %6, %cst_13 [1] : vector<16x128xf32> to vector<16xf32>
    %15 = vector.shape_cast %14 : vector<16xf32> to vector<16x1xf32>
    %16 = vector.shape_cast %15 : vector<16x1xf32> to vector<1x16x1xf32>
    %17 = arith.addf %13, %16 : vector<1x16x1xf32>
    %c0_14 = arith.constant 0 : index
    %c0_15 = arith.constant 0 : index
    %c0_16 = arith.constant 0 : index
    %18 = vector.load %arg6[%c0_14, %c0_15, %c0_16] : memref<1x16x1xf32, #tpu.memory_space<vmem>>, vector<1x16x1xf32>
    tpu.vector_store %arg6[%c0_14, %c0_15, %c0_16], %17 {strides = array<i32>} : memref<1x16x1xf32, #tpu.memory_space<vmem>>, vector<1x16x1xf32>,
    return
  }
  func.func @transform_0(%arg0: i32, %arg1: i32, %arg2: i32) -> (i32, i32) {
    %c1_i32 = arith.constant 1 : i32
    %0 = arith.muli %arg0, %c1_i32 : i32
    %1 = arith.addi %0, %arg2 : i32
    %c0_i32 = arith.constant 0 : i32
    %2 = arith.minsi %1, %c0_i32 : i32
    %c0_i32_0 = arith.constant 0 : i32
    return %arg1, %2 : i32, i32
  }
  func.func @transform_1(%arg0: i32, %arg1: i32, %arg2: i32) -> (i32, i32) {
    %c1_i32 = arith.constant 1 : i32
    %0 = arith.muli %arg0, %c1_i32 : i32
    %1 = arith.addi %0, %arg2 : i32
    %c0_i32 = arith.constant 0 : i32
    %2 = arith.minsi %1, %c0_i32 : i32
    %c0_i32_0 = arith.constant 0 : i32
    return %arg1, %2 : i32, i32
  }
  func.func @transform_2(%arg0: i32, %arg1: i32, %arg2: i32) -> (i32, i32, i32) {
    %c0_i32 = arith.constant 0 : i32
    %c0_i32_0 = arith.constant 0 : i32
    return %arg0, %arg1, %c0_i32 : i32, i32, i32
  }
  func.func @transform_3(%arg0: i32, %arg1: i32, %arg2: i32) -> (i32, i32, i32) {
    %c0_i32 = arith.constant 0 : i32
    %c0_i32_0 = arith.constant 0 : i32
    return %arg0, %arg1, %c0_i32 : i32, i32, i32
  }
}

</mosaic_0001>

<bundles_post_ra>
// kernel: squeeze.3
= control target key start
LH: loop header
LB: loop body
LE: loop exit
PB: predicated region body
PF: predicated region fallthrough
CT: control target
= control target key end

     0   :  { %vm7_vm0 = vcmask 64512   ;;  %s39_s0 = inlined_call_operand.vmem [shape: f32[16], index: 0, kind: input, shape index: {}]   ;;  %s40_s1 = inlined_call_operand.vmem [shape: f32[2,8], index: 1, kind: output, shape index: {}]  }
   0x1   :  { %v4_v0 = vld [vmem:[%s39_s0] sm:$0x1]  ;;  %s22_s0 = smov 120  }
   0x2   :  { %5 = vst [vmem:[#allocation1] sm:$0x1] %v4_v0 }
   0x9   :  { %v9_v1 = vld [vmem:[#allocation1] sm:$0x1]  }
   0xa   :  { %v6_v2 = vld [vmem:[#allocation1] sm:$0x1]   ;;  %10 = vrot.lane.b32.xlu0 %v9_v1, %s22_s0 }
   0xb   :  { %8 = vst.msk [vmem:[#allocation0] sm:$0x1] %vm7_vm0, %v6_v2  }
  0x7c   :  { %v11_v3 = vpop.permute.xlu0 %10  }
  0x7d   :  { %14 = vst.msk [vmem:[#allocation0 + $0x1] sm:$0x1] %vm7_vm0, %v11_v3  }
  0x84   :  { %v18_v4 = vld [vmem:[#allocation0] sm:$0x3] }
  0x85   :  { %20 = vst [vmem:[%s40_s1] sm:$0x3] %v18_v4 }

// kernel: binary_dice_loss.1
= control target key start
LH: loop header
LB: loop body
LE: loop exit
PB: predicated region body
PF: predicated region fallthrough
CT: control target
= control target key end

     0   :  { %9 = vsyncpa [#allocation3], 0  ;;  %s340_s0 = inlined_call_operand.hbm [shape: f32[16,128], index: 0, kind: input, shape index: {}]   ;;  %s341_s1 = inlined_call_operand.hbm [shape: f32[16,128], index: 1, kind: input, shape index: {}]   ;;  %s342_s2 = inlined_call_operand.hbm [shape: f32[1,16,1], index: 2, kind: output, shape index: {0}]   ;;  %s343_s3 = inlined_call_operand.hbm [shape: f32[1,16,1], index: 3, kind: output, shape index: {1}]  }
   0x1   :  { %10 = vsyncpa [#allocation6], 0 }
   0x2   :  { %11 = vsyncpa [#allocation4], 0 }
   0x3   :  { %12 = vsyncpa [#allocation9], 0  ;;  %s238_s12 = smov [#allocation2]   ;;  %s142_s16 = scalar_lea.hbm %s340_s0, 256 }
   0x4   :  { %s23_s13 = sshll.u32 %s238_s12, 4  ;;  %p143_p0 = scmp.ne.s32.totalorder %s340_s0, %s142_s16  ;;  %s24_s13 = int_to_ptr.vmem [resolvable:$true] %s23_s13 }
   0x5   :  { %p146_p1 = scmp.lt.u32.totalorder %s142_s16, %s340_s0 }
   0x7   :  { %p148_p2 = pnand %p146_p1, %p143_p0 }
   0x9   :  { %151 = shalt.err (!%p148_p2)
}
   0xa   :  { %s152_s21 = scalar_lea.vmem %s24_s13, 256  ;;  %p157_p4 = scmp.lt.s32.totalorder %s24_s13, %s24_s13 }
   0xb   :  { %p153_p3 = scmp.ne.s32.totalorder %s24_s13, %s152_s21  ;;  %p158_p5 = scmp.lt.s32.totalorder %s152_s21, %s152_s21 }
   0xd   :  { %p159_p6 = por %p158_p5, %p157_p4 }
   0xf   :  { %p160_p7 = pnand %p159_p6, %p153_p3 }
  0x11   :  { %163 = shalt.err (!%p160_p7)
}
  0x12   :  { %s239_s22 = smov 128   ;;  %s240_s23 = smov 8  }
  0x13   :  { %29 = dma.hbm_to_vmem [thread:$0]  %s340_s0, 256, %s24_s13, [#allocation3], %s239_s22, %s239_s22, %s240_s23  }
  0x14   :  { %s241_s26 = smov [#allocation5]   ;;  %s164_s30 = scalar_lea.hbm %s341_s1, 256 }
  0x15   :  { %s40_s27 = sshll.u32 %s241_s26, 4  ;;  %p165_p8 = scmp.ne.s32.totalorder %s341_s1, %s164_s30  ;;  %s41_s27 = int_to_ptr.vmem [resolvable:$true] %s40_s27 }
  0x16   :  { %p168_p9 = scmp.lt.u32.totalorder %s164_s30, %s341_s1 }
  0x18   :  { %p170_p10 = pnand %p168_p9, %p165_p8 }
  0x1a   :  { %173 = shalt.err (!%p170_p10)
}
  0x1b   :  { %s174_s8 = scalar_lea.vmem %s41_s27, 256  ;;  %p179_p12 = scmp.lt.s32.totalorder %s41_s27, %s41_s27 }
  0x1c   :  { %p175_p11 = scmp.ne.s32.totalorder %s41_s27, %s174_s8  ;;  %p180_p13 = scmp.lt.s32.totalorder %s174_s8, %s174_s8 }
  0x1e   :  { %p181_p0 = por %p180_p13, %p179_p12 }
  0x20   :  { %p182_p1 = pnand %p181_p0, %p175_p11 }
  0x22   :  { %185 = shalt.err (!%p182_p1)
}
  0x23   :  { %46 = dma.hbm_to_vmem [thread:$0]  %s341_s1, 256, %s41_s27, [#allocation6], %s239_s22, %s239_s22, %s240_s23  }
  0x24   :  { %230 = dma.done.wait [#allocation3], 256  }
  0x25   :  { %231 = vsyncadd [#allocation3], 4294967040 }
  0x26   :  { %232 = dma.done.wait [#allocation6], 256  }
  0x27   :  { %233 = vsyncadd [#allocation6], 4294967040  ;;  %vm63_vm0 = vcmask 7168   ;;  %v242_v0 = vmov 0.0   ;;  %v68_v1 = vld [vmem:[#allocation2] sm:$0xff]  ;;  %v70_v2 = vld [vmem:[#allocation5] sm:$0xff] }
  0x28   :  { %66 = vst.msk [vmem:[#allocation8] sm:$0xff] %vm63_vm0, %v242_v0  ;;  %64 = vst.msk [vmem:[#allocation7] sm:$0xff] %vm63_vm0, %v242_v0  ;;  %v69_v3 = vld [vmem:[#allocation2 + $0x8] sm:$0xff]  ;;  %v74_v4 = vadd.f32 %v70_v2, %v68_v1  ;;  %v72_v5 = vmul.f32 %v70_v2, %v68_v1  ;;  %v71_v6 = vld [vmem:[#allocation5 + $0x8] sm:$0xff]  ;;  %s243_s1 = smov [#allocation7]   ;;  %s244_s11 = smov [#allocation8]  }
  0x29   :  { %65 = vst.msk [vmem:[#allocation7 + $0x8] sm:$0xff] %vm63_vm0, %v242_v0  ;;  %67 = vst.msk [vmem:[#allocation8 + $0x8] sm:$0xff] %vm63_vm0, %v242_v0  ;;  %v75_v7 = vadd.f32 %v71_v6, %v69_v3  ;;  %v73_v8 = vmul.f32 %v71_v6, %v69_v3  ;;  %s102_s10 = sshll.u32 %s243_s1, 4  ;;  %s114_s12 = sshll.u32 %s244_s11, 4  ;;  %s103_s10 = int_to_ptr.vmem [resolvable:$true] %s102_s10  ;;  %s301_s12 = int_to_ptr.vmem [resolvable:$true] %s114_s12 }
  0x2a   :  { %89 = vadd.xlane.f32.xlu1 %v74_v4  ;;  %78 = vadd.xlane.f32.xlu0 %v72_v5  ;;  %s186_s13 = scalar_lea.vmem %s103_s10, 256  ;;  %p191_p3 = scmp.lt.s32.totalorder %s103_s10, %s103_s10 }
  0x2b   :  { %p187_p2 = scmp.ne.s32.totalorder %s103_s10, %s186_s13  ;;  %p192_p4 = scmp.lt.s32.totalorder %s186_s13, %s186_s13 }
  0x2d   :  { %p193_p5 = por %p192_p4, %p191_p3 }
  0x2e   :  { %91 = vadd.xlane.f32.xlu1 %v75_v7  ;;  %80 = vadd.xlane.f32.xlu0 %v73_v8 }
  0x2f   :  { %v87_v9 = vld [vmem:[#allocation8] sm:$0xff]  ;;  %v76_v10 = vld [vmem:[#allocation7] sm:$0xff]  ;;  %p194_p6 = pnand %p193_p5, %p187_p2 }
  0x30   :  { %v88_v15 = vld [vmem:[#allocation8 + $0x8] sm:$0xff]  ;;  %v77_v16 = vld [vmem:[#allocation7 + $0x8] sm:$0xff] }
  0xb7   :  { %v90_v11 = vpop.xlane.xlu1 %89  ;;  %v79_v12 = vpop.xlane.xlu0 %78 }
  0xb8   :  { %v93_v13 = vadd.f32 %v90_v11, %v87_v9  ;;  %v82_v14 = vadd.f32 %v79_v12, %v76_v10 }
  0xba   :  { %95 = vst.msk [vmem:[#allocation8] sm:$0xff] %vm63_vm0, %v93_v13  ;;  %85 = vst.msk [vmem:[#allocation7] sm:$0xff] %vm63_vm0, %v82_v14 }
  0xbb   :  { %v92_v17 = vpop.xlane.xlu1 %91  ;;  %v81_v18 = vpop.xlane.xlu0 %80 }
  0xbc   :  { %v94_v19 = vadd.f32 %v92_v17, %v88_v15  ;;  %v83_v20 = vadd.f32 %v81_v18, %v77_v16 }
  0xbe   :  { %96 = vst.msk [vmem:[#allocation8 + $0x8] sm:$0xff] %vm63_vm0, %v94_v19  ;;  %86 = vst.msk [vmem:[#allocation7 + $0x8] sm:$0xff] %vm63_vm0, %v83_v20 }
  0xbf   :  { %197 = shalt.err (!%p194_p6)
}
  0xc0   :  { %s198_s16 = scalar_lea.hbm %s342_s2, 256 }
  0xc1   :  { %p199_p7 = scmp.ne.s32.totalorder %s342_s2, %s198_s16  ;;  %p202_p8 = scmp.lt.u32.totalorder %s198_s16, %s342_s2 }
  0xc3   :  { %p204_p9 = pnand %p202_p8, %p199_p7 }
  0xc5   :  { %207 = shalt.err (!%p204_p9)
}
  0xc6   :  { %108 = dma.vmem_to_hbm [thread:$0]  %s103_s10, 256, %s342_s2, [#allocation4], %s239_s22, %s239_s22, %s240_s23  }
  0xc7   :  { %s208_s25 = scalar_lea.vmem %s301_s12, 256  ;;  %p213_p11 = scmp.lt.s32.totalorder %s301_s12, %s301_s12 }
  0xc8   :  { %p209_p10 = scmp.ne.s32.totalorder %s301_s12, %s208_s25  ;;  %p214_p12 = scmp.lt.s32.totalorder %s208_s25, %s208_s25 }
  0xca   :  { %p215_p13 = por %p214_p12, %p213_p11 }
  0xcc   :  { %p216_p0 = pnand %p215_p13, %p209_p10 }
  0xce   :  { %219 = shalt.err (!%p216_p0)
}
  0xcf   :  { %s220_s28 = scalar_lea.hbm %s343_s3, 256 }
  0xd0   :  { %p221_p1 = scmp.ne.s32.totalorder %s343_s3, %s220_s28  ;;  %p224_p2 = scmp.lt.u32.totalorder %s220_s28, %s343_s3 }
  0xd2   :  { %p226_p3 = pnand %p224_p2, %p221_p1 }
  0xd4   :  { %229 = shalt.err (!%p226_p3)
}
  0xd5   :  { %120 = dma.vmem_to_hbm [thread:$0]  %s301_s12, 256, %s343_s3, [#allocation9], %s239_s22, %s239_s22, %s240_s23  }
  0xd6   :  { %234 = dma.done.wait [#allocation4], 256  }
  0xd7   :  { %235 = vsyncadd [#allocation4], 4294967040 }
  0xd8   :  { %236 = dma.done.wait [#allocation9], 256  }
  0xd9   :  { %237 = vsyncadd [#allocation9], 4294967040 }
  0xda   :  { %127 = vsyncpa [#allocation3], 1 }
  0xdb   :  { %128 = vsyncpa [#allocation6], 1 }
  0xdc   :  { %129 = vsyncpa [#allocation4], 1 }
  0xdd   :  { %130 = vsyncpa [#allocation9], 1 }

</bundles_post_ra>
